<compile_context>
chip_gen: v7x
topology: tpu7x:2x2x1
jax: 0.10.0
libtpu: 0.0.40
codegen_flags: <defaults>
</compile_context>

<pallas_src>
import math
from functools import partial

import jax
import jax.numpy as jnp
from jax.experimental import pallas as pl
from jax.experimental.pallas import tpu as pltpu

# Logical (PyTorch) hidden sizes and their lane-padded counterparts.
L1, L2, L3, L4 = 100, 150, 200, 100
L1P, L2P, L3P, L4P = 128, 256, 256, 128
_BF16_PACK = 16          # bf16 sublane pack: keep batch tiles a multiple of 16


def _round_up(n, m):
    return ((n + m - 1) // m) * m


def _bf16_eup_ok():
    """True when the chip has the bf16 EUP fast path (v6e / v7x and newer)."""
    try:
        kind = jax.devices()[0].device_kind.lower()
    except Exception:
        return False
    if any(t in kind for t in ("v2", "v3", "v4", "v5")):
        return False                      # no bf16 VPU/EUP on v5e and older
    return ("tpu" in kind) or ("v6" in kind) or ("v7" in kind)


# ---------------------------------------------------------------------------
# Kernel
# ---------------------------------------------------------------------------
def _critic_kernel(x_ref, w1_ref, w2_ref, w3_ref, w4_ref, wo_ref, bo_ref,
                   out_ref, *, hidden_exp_dtype):
    def sigmoid(h, exp_dtype):
        # sigmoid(h) = 1 / (1 + exp(-h)): exp on the EUP (bf16 fast path where
        # available), exact divide replaced by an approx EUP reciprocal.
        e = jnp.exp(-(h.astype(exp_dtype)))
        return pl.reciprocal(1.0 + e.astype(jnp.float32), approx=True)

    # fc1..fc4: bias-free linear (bf16 MXU, f32 accumulate) + sigmoid.
    x = x_ref[...].astype(jnp.bfloat16)                    # cast in-kernel
    h = jnp.dot(x, w1_ref[...], preferred_element_type=jnp.float32)
    h = sigmoid(h, hidden_exp_dtype).astype(jnp.bfloat16)
    h = jnp.dot(h, w2_ref[...], preferred_element_type=jnp.float32)
    h = sigmoid(h, hidden_exp_dtype).astype(jnp.bfloat16)
    h = jnp.dot(h, w3_ref[...], preferred_element_type=jnp.float32)
    h = sigmoid(h, hidden_exp_dtype).astype(jnp.bfloat16)
    h = jnp.dot(h, w4_ref[...], preferred_element_type=jnp.float32)
    h = sigmoid(h, jnp.float32)                            # final sigmoid in f32

    # Output layer (out_features == 1): VPU multiply + cross-lane reduce (XLU)
    # instead of a lane-sparse N=1 MXU pass; scalar bias read from SMEM.
    wo = wo_ref[...].astype(jnp.float32)                   # (1, L4P), zero-padded
    v = jnp.sum(h * wo, axis=-1) + bo_ref[0, 0]            # (tb,), lane-dense
    out_ref[...] = v.reshape(out_ref.shape)                # (1, 1, tb) dense store


# ---------------------------------------------------------------------------
# Wrapper
# ---------------------------------------------------------------------------
def _choose_batch_tile(b, max_tile):
    if b < 512:
        # Single tile, rounded to the bf16 sublane pack so vregs stay packed.
        tb = _round_up(max(b, _BF16_PACK), _BF16_PACK)
    else:
        # >= 2 grid steps so the "parallel" batch axis shards across both v7x
        # TensorCores; cap the tile so f32 intermediates stay well inside VMEM.
        tb = min(max_tile, _round_up((b + 1) // 2, _BF16_PACK))
    bp = _round_up(b, tb)
    return tb, bp


def critic_forward(x, params, *, max_batch_tile=2048):
    """x: [B, state_dim] float32.  params: packed weights (see pack_params)."""
    b, state_dim = x.shape
    assert params["w1"].shape[0] == state_dim

    tb, bp = _choose_batch_tile(b, max_batch_tile)
    num_tiles = bp // tb

    # Only the cheap batch-axis zero pad — no feature padding, no wrapper-side
    # bf16 materialization of x.
    if bp != b:
        xp = jnp.zeros((bp, state_dim), x.dtype).at[:b].set(x)
    else:
        xp = x

    flops = 2 * bp * (state_dim * L1P + L1P * L2P + L2P * L3P + L3P * L4P + L4P)
    transcendentals = bp * (L1P + L2P + L3P + L4P)
    bytes_accessed = (
        xp.size * 4
        + sum(int(params[k].size) * 2 for k in ("w1", "w2", "w3", "w4", "wo"))
        + 4                       # bias
        + bp * 4)                 # output

    kernel = partial(
        _critic_kernel,
        hidden_exp_dtype=jnp.bfloat16 if _bf16_eup_ok() else jnp.float32)

    out = pl.pallas_call(
        kernel,
        out_shape=jax.ShapeDtypeStruct((num_tiles, 1, tb), jnp.float32),
        grid=(num_tiles,),
        in_specs=[
            pl.BlockSpec((tb, state_dim), lambda i: (i, 0)),    # activations, tiled
            pl.BlockSpec((state_dim, L1P), lambda i: (0, 0)),   # weights stay resident
            pl.BlockSpec((L1P, L2P), lambda i: (0, 0)),
            pl.BlockSpec((L2P, L3P), lambda i: (0, 0)),
            pl.BlockSpec((L3P, L4P), lambda i: (0, 0)),
            pl.BlockSpec((1, L4P), lambda i: (0, 0)),           # wo as a lane row
            pl.BlockSpec(memory_space=pltpu.MemorySpace.SMEM),  # scalar bias
        ],
        out_specs=pl.BlockSpec((1, 1, tb), lambda i: (i, 0, 0)),  # lane-dense
        compiler_params=pltpu.CompilerParams(
            dimension_semantics=("parallel",)),
        cost_estimate=pl.CostEstimate(
            flops=flops,
            transcendentals=transcendentals,
            bytes_accessed=bytes_accessed),
    )(xp, params["w1"], params["w2"], params["w3"], params["w4"],
      params["wo"], params["bo"])

    return out.reshape(bp, 1)[:b]


# ---------------------------------------------------------------------------
# Parameter initialization (mirrors the PyTorch module's inits) + packing.
# ---------------------------------------------------------------------------
def _xavier_uniform(key, in_f, out_f):
    bound = math.sqrt(6.0 / (in_f + out_f))
    return jax.random.uniform(key, (in_f, out_f), jnp.float32, -bound, bound)


def _kaiming_uniform(key, in_f, out_f):
    # nn.init.kaiming_uniform_ defaults (a=0, fan_in) -> bound = sqrt(6/fan_in),
    # exactly as called on outputLayer.weight in the PyTorch module.
    bound = math.sqrt(6.0 / in_f)
    return jax.random.uniform(key, (in_f, out_f), jnp.float32, -bound, bound)


def init_raw_params(key, state_dim):
    """Unpadded f32 parameters, stored [in, out] (transposed vs torch)."""
    k1, k2, k3, k4, k5, k6 = jax.random.split(key, 6)
    b_bound = 1.0 / math.sqrt(L4)             # nn.Linear default bias init
    return {
        "w1": _xavier_uniform(k1, state_dim, L1),
        "w2": _xavier_uniform(k2, L1, L2),
        "w3": _xavier_uniform(k3, L2, L3),
        "w4": _xavier_uniform(k4, L3, L4),
        "wo": _kaiming_uniform(k5, L4, 1),                 # (L4, 1)
        "bo": jax.random.uniform(k6, (), jnp.float32, -b_bound, b_bound),
    }


def _pad_to(w, shape):
    out = jnp.zeros(shape, w.dtype)
    return out.at[: w.shape[0], : w.shape[1]].set(w)


def pack_params(raw, state_dim):
    """Lane-pad hidden widths, cast to bf16, lay wo out as a (1, L4P) row."""
    return {
        "w1": _pad_to(raw["w1"], (state_dim, L1P)).astype(jnp.bfloat16),
        "w2": _pad_to(raw["w2"], (L1P, L2P)).astype(jnp.bfloat16),
        "w3": _pad_to(raw["w3"], (L2P, L3P)).astype(jnp.bfloat16),
        "w4": _pad_to(raw["w4"], (L3P, L4P)).astype(jnp.bfloat16),
        "wo": _pad_to(raw["wo"].T, (1, L4P)).astype(jnp.bfloat16),
        "bo": raw["bo"].reshape(1, 1).astype(jnp.float32),
    }


# ---------------------------------------------------------------------------
# References
# ---------------------------------------------------------------------------
def critic_reference_f32(x, raw):
    """Pure-f32 reference matching the PyTorch CriticNetwork forward."""
    h = x
    for k in ("w1", "w2", "w3", "w4"):
        h = jax.nn.sigmoid(h @ raw[k])
    return h @ raw["wo"] + raw["bo"]


def critic_reference_mixed(x, packed):
    """Pure-JAX reference mirroring the kernel's bf16/f32 mixed precision."""
    h = x.astype(jnp.bfloat16)
    for k in ("w1", "w2", "w3"):
        h = jax.nn.sigmoid(
            jnp.dot(h, packed[k], preferred_element_type=jnp.float32)
        ).astype(jnp.bfloat16)
    h = jax.nn.sigmoid(
        jnp.dot(h, packed["w4"], preferred_element_type=jnp.float32))
    wo = packed["wo"].astype(jnp.float32)
    return jnp.sum(h * wo, axis=-1, keepdims=True) + packed["bo"][0, 0]


if __name__ == "__main__":
    key = jax.random.PRNGKey(0)
    kx, kp = jax.random.split(key)

    batch, state_dim = 8, 16
    x = jax.random.normal(kx, (batch, state_dim), jnp.float32)

    raw = init_raw_params(kp, state_dim)
    params = pack_params(raw, state_dim)

    out = critic_forward(x, params)
    out = jax.block_until_ready(out)
    assert out.shape == (batch, 1), out.shape

    # Tight check vs the bf16/f32 mixed-precision mirror, loose check vs the
    # pure-f32 module semantics (bf16 weights drift across 4 stacked sigmoids).
    ref_mixed = critic_reference_mixed(x, params)
    ref_f32 = critic_reference_f32(x, raw)
    assert jnp.allclose(out, ref_mixed, atol=1e-2, rtol=1e-2), (out, ref_mixed)
    assert jnp.allclose(out, ref_f32, atol=5e-2, rtol=5e-2), (out, ref_f32)

    print("KERNEL_OK")
</pallas_src>

<mosaic_0001>
module attributes {stable_mosaic.version = 11 : i64} {
  func.func @_critic_kernel(%arg0: i32, %arg1: memref<16x16xf32, #tpu.memory_space<vmem>>, %arg2: memref<16x128xbf16, #tpu.memory_space<vmem>>, %arg3: memref<128x256xbf16, #tpu.memory_space<vmem>>, %arg4: memref<256x256xbf16, #tpu.memory_space<vmem>>, %arg5: memref<256x128xbf16, #tpu.memory_space<vmem>>, %arg6: memref<1x128xbf16, #tpu.memory_space<vmem>>, %arg7: memref<1x1xf32, #tpu.memory_space<smem>>, %arg8: memref<1x1x16xf32, #tpu.memory_space<vmem>>) attributes {dimension_semantics = [#tpu.dimension_semantics<parallel>], iteration_bounds = array<i64: 1>, scalar_prefetch = 0 : i64, scratch_operands = 0 : i64, tpu.core_type = #tpu.core_type<tc>, window_params = [{transform_indices = @transform_0, window_bounds = array<i64: 16, 16>}, {pipeline_mode = #tpu.pipeline_mode<synchronous>, transform_indices = @transform_1, window_bounds = array<i64: 16, 128>}, {pipeline_mode = #tpu.pipeline_mode<synchronous>, transform_indices = @transform_2, window_bounds = array<i64: 128, 256>}, {pipeline_mode = #tpu.pipeline_mode<synchronous>, transform_indices = @transform_3, window_bounds = array<i64: 256, 256>}, {pipeline_mode = #tpu.pipeline_mode<synchronous>, transform_indices = @transform_4, window_bounds = array<i64: 256, 128>}, {pipeline_mode = #tpu.pipeline_mode<synchronous>, transform_indices = @transform_5, window_bounds = array<i64: 1, 128>}, {transform_indices = @transform_6, window_bounds = array<i64: 1, 1>}, {transform_indices = @transform_7, window_bounds = array<i64: 1, 1, 16>}]} {
    %c0 = arith.constant 0 : index
    %c0_0 = arith.constant 0 : index
    %0 = vector.load %arg1[%c0, %c0_0] : memref<16x16xf32, #tpu.memory_space<vmem>>, vector<16x16xf32>
    %1 = arith.truncf %0 : vector<16x16xf32> to vector<16x16xbf16>
    %c0_1 = arith.constant 0 : index
    %c0_2 = arith.constant 0 : index
    %2 = vector.load %arg2[%c0_1, %c0_2] : memref<16x128xbf16, #tpu.memory_space<vmem>>, vector<16x128xbf16>
    %cst = arith.constant dense<0.000000e+00> : vector<16x128xf32>
    %3 = tpu.matmul %1, %2, %cst {dimension_numbers = #tpu.dot_dimension_numbers<[1], [0], [0], [1], [0, 0, 1, 1], [], []>} : vector<16x16xbf16>, vector<16x128xbf16>, vector<16x128xf32> -> vector<16x128xf32>
    %cst_3 = arith.constant 0.000000e+00 : f32
    %4 = vector.broadcast %cst_3 : f32 to vector<16x128xf32>
    %5 = arith.subf %4, %3 : vector<16x128xf32>
    %6 = math.exp %5 : vector<16x128xf32>
    %cst_4 = arith.constant 1.000000e+00 : f32
    %7 = vector.broadcast %cst_4 : f32 to vector<16x128xf32>
    %8 = arith.addf %7, %6 : vector<16x128xf32>
    %9 = tpu.reciprocal %8 {approx = true} : vector<16x128xf32> -> vector<16x128xf32>
    %10 = arith.truncf %9 : vector<16x128xf32> to vector<16x128xbf16>
    %c0_5 = arith.constant 0 : index
    %c0_6 = arith.constant 0 : index
    %11 = vector.load %arg3[%c0_5, %c0_6] : memref<128x256xbf16, #tpu.memory_space<vmem>>, vector<128x256xbf16>
    %cst_7 = arith.constant dense<0.000000e+00> : vector<16x256xf32>
    %12 = tpu.matmul %10, %11, %cst_7 {dimension_numbers = #tpu.dot_dimension_numbers<[1], [0], [0], [1], [0, 0, 1, 1], [], []>} : vector<16x128xbf16>, vector<128x256xbf16>, vector<16x256xf32> -> vector<16x256xf32>
    %cst_8 = arith.constant 0.000000e+00 : f32
    %13 = vector.broadcast %cst_8 : f32 to vector<16x256xf32>
    %14 = arith.subf %13, %12 : vector<16x256xf32>
    %15 = math.exp %14 : vector<16x256xf32>
    %cst_9 = arith.constant 1.000000e+00 : f32
    %16 = vector.broadcast %cst_9 : f32 to vector<16x256xf32>
    %17 = arith.addf %16, %15 : vector<16x256xf32>
    %18 = tpu.reciprocal %17 {approx = true} : vector<16x256xf32> -> vector<16x256xf32>
    %19 = arith.truncf %18 : vector<16x256xf32> to vector<16x256xbf16>
    %c0_10 = arith.constant 0 : index
    %c0_11 = arith.constant 0 : index
    %20 = vector.load %arg4[%c0_10, %c0_11] : memref<256x256xbf16, #tpu.memory_space<vmem>>, vector<256x256xbf16>
    %cst_12 = arith.constant dense<0.000000e+00> : vector<16x256xf32>
    %21 = tpu.matmul %19, %20, %cst_12 {dimension_numbers = #tpu.dot_dimension_numbers<[1], [0], [0], [1], [0, 0, 1, 1], [], []>} : vector<16x256xbf16>, vector<256x256xbf16>, vector<16x256xf32> -> vector<16x256xf32>
    %cst_13 = arith.constant 0.000000e+00 : f32
    %22 = vector.broadcast %cst_13 : f32 to vector<16x256xf32>
    %23 = arith.subf %22, %21 : vector<16x256xf32>
    %24 = math.exp %23 : vector<16x256xf32>
    %cst_14 = arith.constant 1.000000e+00 : f32
    %25 = vector.broadcast %cst_14 : f32 to vector<16x256xf32>
    %26 = arith.addf %25, %24 : vector<16x256xf32>
    %27 = tpu.reciprocal %26 {approx = true} : vector<16x256xf32> -> vector<16x256xf32>
    %28 = arith.truncf %27 : vector<16x256xf32> to vector<16x256xbf16>
    %c0_15 = arith.constant 0 : index
    %c0_16 = arith.constant 0 : index
    %29 = vector.load %arg5[%c0_15, %c0_16] : memref<256x128xbf16, #tpu.memory_space<vmem>>, vector<256x128xbf16>
    %cst_17 = arith.constant dense<0.000000e+00> : vector<16x128xf32>
    %30 = tpu.matmul %28, %29, %cst_17 {dimension_numbers = #tpu.dot_dimension_numbers<[1], [0], [0], [1], [0, 0, 1, 1], [], []>} : vector<16x256xbf16>, vector<256x128xbf16>, vector<16x128xf32> -> vector<16x128xf32>
    %cst_18 = arith.constant 0.000000e+00 : f32
    %31 = vector.broadcast %cst_18 : f32 to vector<16x128xf32>
    %32 = arith.subf %31, %30 : vector<16x128xf32>
    %33 = math.exp %32 : vector<16x128xf32>
    %cst_19 = arith.constant 1.000000e+00 : f32
    %34 = vector.broadcast %cst_19 : f32 to vector<16x128xf32>
    %35 = arith.addf %34, %33 : vector<16x128xf32>
    %36 = tpu.reciprocal %35 {approx = true} : vector<16x128xf32> -> vector<16x128xf32>
    %c0_20 = arith.constant 0 : index
    %c0_21 = arith.constant 0 : index
    %37 = vector.load %arg6[%c0_20, %c0_21] : memref<1x128xbf16, #tpu.memory_space<vmem>>, vector<1x128xbf16>
    %38 = arith.extf %37 : vector<1x128xbf16> to vector<1x128xf32>
    %39 = vector.broadcast %38 : vector<1x128xf32> to vector<16x128xf32>
    %40 = arith.mulf %36, %39 : vector<16x128xf32>
    %cst_22 = arith.constant dense<0.000000e+00> : vector<16xf32>
    %41 = vector.multi_reduction <add>, %40, %cst_22 [1] : vector<16x128xf32> to vector<16xf32>
    %c0_23 = arith.constant 0 : index
    %c0_24 = arith.constant 0 : index
    %42 = memref.load %arg7[%c0_23, %c0_24] : memref<1x1xf32, #tpu.memory_space<smem>>
    %43 = vector.broadcast %42 : f32 to vector<16xf32>
    %44 = arith.addf %41, %43 : vector<16xf32>
    %45 = vector.shape_cast %44 : vector<16xf32> to vector<1x1x16xf32>
    %c0_25 = arith.constant 0 : index
    %c0_26 = arith.constant 0 : index
    %c0_27 = arith.constant 0 : index
    %46 = vector.load %arg8[%c0_25, %c0_26, %c0_27] : memref<1x1x16xf32, #tpu.memory_space<vmem>>, vector<1x1x16xf32>
    tpu.vector_store %arg8[%c0_25, %c0_26, %c0_27], %45 {strides = array<i32>} : memref<1x1x16xf32, #tpu.memory_space<vmem>>, vector<1x1x16xf32>,
    return
  }
  func.func @transform_0(%arg0: i32) -> (i32, i32) {
    %c0_i32 = arith.constant 0 : i32
    %c0_i32_0 = arith.constant 0 : i32
    return %arg0, %c0_i32 : i32, i32
  }
  func.func @transform_1(%arg0: i32) -> (i32, i32) {
    %c0_i32 = arith.constant 0 : i32
    %c0_i32_0 = arith.constant 0 : i32
    %c0_i32_1 = arith.constant 0 : i32
    return %c0_i32, %c0_i32_0 : i32, i32
  }
  func.func @transform_2(%arg0: i32) -> (i32, i32) {
    %c0_i32 = arith.constant 0 : i32
    %c0_i32_0 = arith.constant 0 : i32
    %c0_i32_1 = arith.constant 0 : i32
    return %c0_i32, %c0_i32_0 : i32, i32
  }
  func.func @transform_3(%arg0: i32) -> (i32, i32) {
    %c0_i32 = arith.constant 0 : i32
    %c0_i32_0 = arith.constant 0 : i32
    %c0_i32_1 = arith.constant 0 : i32
    return %c0_i32, %c0_i32_0 : i32, i32
  }
  func.func @transform_4(%arg0: i32) -> (i32, i32) {
    %c0_i32 = arith.constant 0 : i32
    %c0_i32_0 = arith.constant 0 : i32
    %c0_i32_1 = arith.constant 0 : i32
    return %c0_i32, %c0_i32_0 : i32, i32
  }
  func.func @transform_5(%arg0: i32) -> (i32, i32) {
    %c0_i32 = arith.constant 0 : i32
    %c0_i32_0 = arith.constant 0 : i32
    %c0_i32_1 = arith.constant 0 : i32
    return %c0_i32, %c0_i32_0 : i32, i32
  }
  func.func @transform_6(%arg0: i32) -> (i32, i32) {
    %c0_i32 = arith.constant 0 : i32
    %c0_i32_0 = arith.constant 0 : i32
    %c0_i32_1 = arith.constant 0 : i32
    return %c0_i32, %c0_i32_0 : i32, i32
  }
  func.func @transform_7(%arg0: i32) -> (i32, i32, i32) {
    %c0_i32 = arith.constant 0 : i32
    %c0_i32_0 = arith.constant 0 : i32
    %c0_i32_1 = arith.constant 0 : i32
    return %arg0, %c0_i32, %c0_i32_0 : i32, i32, i32
  }
}

</mosaic_0001>

<bundles_post_ra>
// kernel: tpu_custom_call.1
= control target key start
LH: loop header
LB: loop body
LE: loop exit
PB: predicated region body
PF: predicated region fallthrough
CT: control target
= control target key end

     0   :  { %13 = vsyncpa [#allocation4], 0  ;;  %s1344_s0 = inlined_call_operand.hbm [shape: f32[16,16], index: 0, kind: input, shape index: {}]   ;;  %s1345_s1 = inlined_call_operand.hbm [shape: bf16[16,128], index: 1, kind: input, shape index: {}]   ;;  %s1346_s2 = inlined_call_operand.hbm [shape: bf16[128,256], index: 2, kind: input, shape index: {}]   ;;  %s1347_s3 = inlined_call_operand.hbm [shape: bf16[256,256], index: 3, kind: input, shape index: {}]   ;;  %s1348_s4 = inlined_call_operand.hbm [shape: bf16[256,128], index: 4, kind: input, shape index: {}]   ;;  %s1349_s5 = inlined_call_operand.vmem [shape: bf16[1,128], index: 5, kind: input, shape index: {}]   ;;  %s1350_s6 = inlined_call_operand.<no memory space> [shape: f32[1,1], index: 6, kind: input, shape index: {}]   ;;  %s1351_s7 = inlined_call_operand.hbm [shape: f32[1,1,16], index: 7, kind: output, shape index: {}]  }
   0x1   :  { %14 = vsyncpa [#allocation7], 0 }
   0x2   :  { %15 = vsyncpa [#allocation10], 0 }
   0x3   :  { %16 = vsyncpa [#allocation5], 0  ;;  %s1198_s24 = smov [#allocation6]   ;;  %s1058_s28 = scalar_lea.hbm %s1345_s1, 128 }
   0x4   :  { %s34_s25 = sshll.u32 %s1198_s24, 4  ;;  %p1059_p0 = scmp.ne.s32.totalorder %s1345_s1, %s1058_s28  ;;  %s35_s25 = int_to_ptr.vmem [resolvable:$true] %s34_s25 }
   0x5   :  { %p1062_p1 = scmp.lt.u32.totalorder %s1058_s28, %s1345_s1 }
   0x7   :  { %p1064_p2 = pnand %p1062_p1, %p1059_p0 }
   0x9   :  { %1067 = shalt.err (!%p1064_p2)
}
   0xa   :  { %s1068_s10 = scalar_lea.vmem %s35_s25, 128  ;;  %p1073_p4 = scmp.lt.s32.totalorder %s35_s25, %s35_s25 }
   0xb   :  { %p1069_p3 = scmp.ne.s32.totalorder %s35_s25, %s1068_s10  ;;  %p1074_p5 = scmp.lt.s32.totalorder %s1068_s10, %s1068_s10 }
   0xd   :  { %p1075_p6 = por %p1074_p5, %p1073_p4 }
   0xf   :  { %p1076_p7 = pnand %p1075_p6, %p1069_p3 }
  0x11   :  { %1079 = shalt.err (!%p1076_p7)
}
  0x12   :  { %s1199_s11 = smov 64   ;;  %s1200_s12 = smov 4  }
  0x13   :  { %40 = dma.hbm_to_vmem [thread:$0]  %s1345_s1, 128, %s35_s25, [#allocation7], %s1199_s11, %s1199_s11, %s1200_s12  }
  0x14   :  { %s1201_s15 = smov [#allocation9]   ;;  %s1202_s17 = smov [#allocation3]  }
  0x15   :  { %s58_s16 = sshll.u32 %s1201_s15, 4  ;;  %s22_s18 = sshll.u32 %s1202_s17, 4  ;;  %s59_s16 = int_to_ptr.vmem [resolvable:$true] %s58_s16  ;;  %s23_s18 = int_to_ptr.vmem [resolvable:$true] %s22_s18 }
  0x16   :  { %s1080_s21 = scalar_lea.hbm %s1347_s3, 4096 }
  0x17   :  { %p1081_p8 = scmp.ne.s32.totalorder %s1347_s3, %s1080_s21  ;;  %p1084_p9 = scmp.lt.u32.totalorder %s1080_s21, %s1347_s3 }
  0x19   :  { %p1086_p10 = pnand %p1084_p9, %p1081_p8 }
  0x1b   :  { %1089 = shalt.err (!%p1086_p10)
}
  0x1c   :  { %s1090_s1 = scalar_lea.vmem %s59_s16, 4096  ;;  %p1095_p12 = scmp.lt.s32.totalorder %s59_s16, %s59_s16 }
  0x1d   :  { %p1091_p11 = scmp.ne.s32.totalorder %s59_s16, %s1090_s1  ;;  %p1096_p13 = scmp.lt.s32.totalorder %s1090_s1, %s1090_s1 }
  0x1f   :  { %p1097_p0 = por %p1096_p13, %p1095_p12 }
  0x21   :  { %p1098_p1 = pnand %p1097_p0, %p1091_p11 }
  0x23   :  { %1101 = shalt.err (!%p1098_p1)
}
  0x24   :  { %s1203_s25 = smov 128   ;;  %s1204_s27 = smov 8  }
  0x25   :  { %64 = dma.hbm_to_vmem [thread:$0]  %s1347_s3, 4096, %s59_s16, [#allocation10], %s1203_s25, %s1203_s25, %s1204_s27  }
  0x26   :  { %s1102_s9 = scalar_lea.hbm %s1344_s0, 256 }
  0x27   :  { %p1103_p2 = scmp.ne.s32.totalorder %s1344_s0, %s1102_s9  ;;  %p1106_p3 = scmp.lt.u32.totalorder %s1102_s9, %s1344_s0 }
  0x29   :  { %p1108_p4 = pnand %p1106_p3, %p1103_p2 }
  0x2b   :  { %1111 = shalt.err (!%p1108_p4)
}
  0x2c   :  { %s1112_s17 = scalar_lea.vmem %s23_s18, 256  ;;  %p1117_p6 = scmp.lt.s32.totalorder %s23_s18, %s23_s18 }
  0x2d   :  { %p1113_p5 = scmp.ne.s32.totalorder %s23_s18, %s1112_s17  ;;  %p1118_p7 = scmp.lt.s32.totalorder %s1112_s17, %s1112_s17 }
  0x2f   :  { %p1119_p8 = por %p1118_p7, %p1117_p6 }
  0x31   :  { %p1120_p9 = pnand %p1119_p8, %p1113_p5 }
  0x33   :  { %1123 = shalt.err (!%p1120_p9)
}
  0x34   :  { %28 = dma.hbm_to_vmem [thread:$0]  %s1344_s0, 256, %s23_s18, [#allocation4], %s1203_s25, %s1203_s25, %s1204_s27  }
  0x35   :  { %s1205_s19 = smov [#allocation8]   ;;  %s1206_s21 = smov [#allocation11]  }
  0x36   :  { %s46_s20 = sshll.u32 %s1205_s19, 4  ;;  %s70_s22 = sshll.u32 %s1206_s21, 4  ;;  %s47_s20 = int_to_ptr.vmem [resolvable:$true] %s46_s20  ;;  %s71_s22 = int_to_ptr.vmem [resolvable:$true] %s70_s22 }
  0x37   :  { %s1124_s26 = scalar_lea.hbm %s1346_s2, 2048 }
  0x38   :  { %p1125_p10 = scmp.ne.s32.totalorder %s1346_s2, %s1124_s26  ;;  %p1128_p11 = scmp.lt.u32.totalorder %s1124_s26, %s1346_s2 }
  0x3a   :  { %p1130_p12 = pnand %p1128_p11, %p1125_p10 }
  0x3c   :  { %1133 = shalt.err (!%p1130_p12)
}
  0x3d   :  { %s1134_s0 = scalar_lea.vmem %s47_s20, 2048  ;;  %p1139_p0 = scmp.lt.s32.totalorder %s47_s20, %s47_s20 }
  0x3e   :  { %p1135_p13 = scmp.ne.s32.totalorder %s47_s20, %s1134_s0  ;;  %p1140_p1 = scmp.lt.s32.totalorder %s1134_s0, %s1134_s0 }
  0x40   :  { %p1141_p2 = por %p1140_p1, %p1139_p0 }
  0x42   :  { %p1142_p3 = pnand %p1141_p2, %p1135_p13 }
  0x44   :  { %1145 = shalt.err (!%p1142_p3)
}
  0x45   :  { %52 = dma.hbm_to_vmem [thread:$0]  %s1346_s2, 2048, %s47_s20, [#allocation7], %s1203_s25, %s1203_s25, %s1204_s27  }
  0x46   :  { %s1146_s13 = scalar_lea.hbm %s1348_s4, 2048 }
  0x47   :  { %p1147_p4 = scmp.ne.s32.totalorder %s1348_s4, %s1146_s13  ;;  %p1150_p5 = scmp.lt.u32.totalorder %s1146_s13, %s1348_s4 }
  0x49   :  { %p1152_p6 = pnand %p1150_p5, %p1147_p4 }
  0x4b   :  { %1155 = shalt.err (!%p1152_p6)
}
  0x4c   :  { %s1156_s16 = scalar_lea.vmem %s71_s22, 2048  ;;  %p1161_p8 = scmp.lt.s32.totalorder %s71_s22, %s71_s22 }
  0x4d   :  { %p1157_p7 = scmp.ne.s32.totalorder %s71_s22, %s1156_s16  ;;  %p1162_p9 = scmp.lt.s32.totalorder %s1156_s16, %s1156_s16 }
  0x4f   :  { %p1163_p10 = por %p1162_p9, %p1161_p8 }
  0x51   :  { %p1164_p11 = pnand %p1163_p10, %p1157_p7 }
  0x53   :  { %1167 = shalt.err (!%p1164_p11)
}
  0x54   :  { %76 = dma.hbm_to_vmem [thread:$0]  %s1348_s4, 2048, %s71_s22, [#allocation10], %s1199_s11, %s1199_s11, %s1200_s12  }
  0x55   :  { %1190 = dma.done.wait [#allocation4], 256  }
  0x56   :  { %1191 = vsyncadd [#allocation4], 4294967040 }
  0x57   :  { %1192 = dma.done.wait [#allocation7], 2176  }
  0x58   :  { %1193 = vsyncadd [#allocation7], 4294965120 }
  0x59   :  { %1194 = dma.done.wait [#allocation10], 6144  }
  0x5a   :  { %1195 = vsyncadd [#allocation10], 4294961152  ;;  %v1207_v0 = vmov 0.0   ;;  %vm1208_vm0 = vmmov 0   ;;  %v921_v1 = vld [vmem:[#allocation6] sm:$0xff]   ;;  %v97_v2 = vld [vmem:[#allocation3] sm:$0xff] }
  0x5b   :  { %902 = vmatprep.subr.bf16.mxu0 %v1207_v0  ;;  %904 = vmatprep.mubr.msk.bf16.mxu0 %vm1208_vm0, %v1207_v0  ;;  %v98_v3 = vld [vmem:[#allocation3 + $0x8] sm:$0xff]  ;;  %vm108_vm1 = vcmask 130048   ;;  %v922_v5 = vld [vmem:[#allocation8 + $0x4] ss:$8 sps:$4 sm:$0xff]   ;;  %v924_v6 = vld [vmem:[#allocation8] ss:$8 sps:$4 sm:$0xff]  }
  0x5c   :  { %903 = vmatpush3.bf16.msra.mxu0 %v921_v1  ;;  %v99_v4 = vpack.c.bf16 %v98_v3, %v97_v2  ;;  %260 = vmatprep.subr.bf16.mxu1 %v922_v5  ;;  %v925_v7 = vld [vmem:[#allocation8 + $0x14] ss:$8 sps:$4 sm:$0xff]   ;;  %v927_v8 = vld [vmem:[#allocation8 + $0x10] ss:$8 sps:$4 sm:$0xff]   ;;  %v928_v9 = vld [vmem:[#allocation8 + $0x24] ss:$8 sps:$4 sm:$0xff]  }
  0x5d   :  { %261 = vmatpush1.bf16.msra.mxu1 %v924_v6  ;;  %v930_v10 = vld [vmem:[#allocation8 + $0x20] ss:$8 sps:$4 sm:$0xff]   ;;  %v931_v11 = vld [vmem:[#allocation8 + $0x34] ss:$8 sps:$4 sm:$0xff]   ;;  %v933_v12 = vld [vmem:[#allocation8 + $0x30] ss:$8 sps:$4 sm:$0xff]  }
  0x5e   :  { %262 = vmatprep.subr.bf16.mxu1 %v925_v7  ;;  %v934_v13 = vld [vmem:[#allocation8 + $0x44] ss:$8 sps:$4 sm:$0xff]   ;;  %v936_v14 = vld [vmem:[#allocation8 + $0x40] ss:$8 sps:$4 sm:$0xff]   ;;  %v937_v15 = vld [vmem:[#allocation8 + $0x54] ss:$8 sps:$4 sm:$0xff]  }
  0x5f   :  { %905 = vmatmul.mubr.msk.bf16.vlgmr.msra.gmra.mrb[0].mxu0 %vm108_vm1, %v99_v4  ;;  %v939_v16 = vld [vmem:[#allocation8 + $0x50] ss:$8 sps:$4 sm:$0xff]   ;;  %v940_v17 = vld [vmem:[#allocation8 + $0x64] ss:$8 sps:$4 sm:$0xff]   ;;  %v942_v18 = vld [vmem:[#allocation8 + $0x60] ss:$8 sps:$4 sm:$0xff]  }
  0x60   :  { %v1209_v19 = vmov 0   ;;  %v943_v20 = vld [vmem:[#allocation8 + $0x74] ss:$8 sps:$4 sm:$0xff]   ;;  %v945_v21 = vld [vmem:[#allocation8 + $0x70] ss:$8 sps:$4 sm:$0xff]   ;;  %vm790_vm2 = vcmask 130112  }
  0x61   :  { %263 = vmatpush1.bf16.msra.mxu1 %v927_v8  ;;  %292 = vmatprep.mubr.bf16.mxu1 %v1209_v19  ;;  %v946_v22 = vld [vmem:[#allocation9] ss:$8 sps:$4 sm:$0xff]   ;;  %v948_v23 = vld [vmem:[#allocation9 + $0x4] ss:$8 sps:$4 sm:$0xff]   ;;  %v951_v24 = vld [vmem:[#allocation9 + $0x14] ss:$8 sps:$4 sm:$0xff]  }
  0x62   :  { %264 = vmatprep.subr.bf16.mxu1 %v928_v9  ;;  %517 = vmatprep.subr.bf16.mxu0 %v948_v23  ;;  %v949_v25 = vld [vmem:[#allocation9 + $0x10] ss:$8 sps:$4 sm:$0xff]   ;;  %v954_v26 = vld [vmem:[#allocation9 + $0x24] ss:$8 sps:$4 sm:$0xff]   ;;  %v952_v27 = vld [vmem:[#allocation9 + $0x20] ss:$8 sps:$4 sm:$0xff]  }
  0x63   :  { %518 = vmatpush1.bf16.msra.mxu0 %v946_v22  ;;  %v957_v28 = vld [vmem:[#allocation9 + $0x34] ss:$8 sps:$4 sm:$0xff]   ;;  %v955_v29 = vld [vmem:[#allocation9 + $0x30] ss:$8 sps:$4 sm:$0xff]   ;;  %v960_v30 = vld [vmem:[#allocation9 + $0x44] ss:$8 sps:$4 sm:$0xff]  }
  0x64   :  { %519 = vmatprep.subr.bf16.mxu0 %v951_v24  ;;  %v958_v31 = vld [vmem:[#allocation9 + $0x40] ss:$8 sps:$4 sm:$0xff]   ;;  %v963_v32 = vld [vmem:[#allocation9 + $0x54] ss:$8 sps:$4 sm:$0xff]   ;;  %v961_v33 = vld [vmem:[#allocation9 + $0x50] ss:$8 sps:$4 sm:$0xff]  }
  0x65   :  { %265 = vmatpush1.bf16.msra.mxu1 %v930_v10  ;;  %v966_v34 = vld [vmem:[#allocation9 + $0x64] ss:$8 sps:$4 sm:$0xff]   ;;  %v964_v35 = vld [vmem:[#allocation9 + $0x60] ss:$8 sps:$4 sm:$0xff]   ;;  %v969_v36 = vld [vmem:[#allocation9 + $0x74] ss:$8 sps:$4 sm:$0xff]  }
  0x66   :  { %266 = vmatprep.subr.bf16.mxu1 %v931_v11  ;;  %v967_v37 = vld [vmem:[#allocation9 + $0x70] ss:$8 sps:$4 sm:$0xff]   ;;  %v972_v53 = vld [vmem:[#allocation9 + $0x84] ss:$8 sps:$4 sm:$0xff]   ;;  %v970_v54 = vld [vmem:[#allocation9 + $0x80] ss:$8 sps:$4 sm:$0xff]  }
  0x67   :  { %520 = vmatpush1.bf16.msra.mxu0 %v949_v25  ;;  %v975_v55 = vld [vmem:[#allocation9 + $0x94] ss:$8 sps:$4 sm:$0xff]   ;;  %v973_v56 = vld [vmem:[#allocation9 + $0x90] ss:$8 sps:$4 sm:$0xff]   ;;  %v978_v57 = vld [vmem:[#allocation9 + $0xa4] ss:$8 sps:$4 sm:$0xff]  }
  0x68   :  { %521 = vmatprep.subr.bf16.mxu0 %v954_v26  ;;  %v976_v58 = vld [vmem:[#allocation9 + $0xa0] ss:$8 sps:$4 sm:$0xff]   ;;  %v981_v59 = vld [vmem:[#allocation9 + $0xb4] ss:$8 sps:$4 sm:$0xff]   ;;  %v979_v60 = vld [vmem:[#allocation9 + $0xb0] ss:$8 sps:$4 sm:$0xff]  }
  0x69   :  { %267 = vmatpush1.bf16.msra.mxu1 %v933_v12  ;;  %v984_v61 = vld [vmem:[#allocation9 + $0xc4] ss:$8 sps:$4 sm:$0xff]   ;;  %v982_v62 = vld [vmem:[#allocation9 + $0xc0] ss:$8 sps:$4 sm:$0xff]   ;;  %v985_v63 = vld [vmem:[#allocation9 + $0xd0] ss:$8 sps:$4 sm:$0xff]  }
  0x6a   :  { %268 = vmatprep.subr.bf16.mxu1 %v934_v13  ;;  %v987_v0 = vld [vmem:[#allocation9 + $0xd4] ss:$8 sps:$4 sm:$0xff]   ;;  %v990_v1 = vld [vmem:[#allocation9 + $0xe4] ss:$8 sps:$4 sm:$0xff]   ;;  %v988_v2 = vld [vmem:[#allocation9 + $0xe0] ss:$8 sps:$4 sm:$0xff]  }
  0x6b   :  { %522 = vmatpush1.bf16.msra.mxu0 %v952_v27  ;;  %v993_v3 = vld [vmem:[#allocation9 + $0xf4] ss:$8 sps:$4 sm:$0xff]   ;;  %v991_v4 = vld [vmem:[#allocation9 + $0xf0] ss:$8 sps:$4 sm:$0xff]   ;;  %vm793_vm3 = vcmask 122880  }
  0x6c   :  { %523 = vmatprep.subr.bf16.mxu0 %v957_v28 }
  0x6d   :  { %269 = vmatpush1.bf16.msra.mxu1 %v936_v14 }
  0x6e   :  { %270 = vmatprep.subr.bf16.mxu1 %v937_v15 }
  0x6f   :  { %524 = vmatpush1.bf16.msra.mxu0 %v955_v29 }
  0x70   :  { %525 = vmatprep.subr.bf16.mxu0 %v960_v30 }
  0x71   :  { %271 = vmatpush1.bf16.msra.mxu1 %v939_v16 }
  0x72   :  { %272 = vmatprep.subr.bf16.mxu1 %v940_v17 }
  0x73   :  { %526 = vmatpush1.bf16.msra.mxu0 %v958_v31  ;;  %v994_v31 = vld [vmem:[#allocation11 + $0x40] sm:$0xff]  }
  0x74   :  { %527 = vmatprep.subr.bf16.mxu0 %v963_v32  ;;  %v995_v32 = vld [vmem:[#allocation11] sm:$0xff]  }
  0x75   :  { %273 = vmatpush1.bf16.msra.mxu1 %v942_v18 }
  0x76   :  { %274 = vmatprep.subr.bf16.mxu1 %v943_v20 }
  0x77   :  { %528 = vmatpush1.bf16.msra.mxu0 %v961_v33  ;;  %v996_v33 = vld [vmem:[#allocation11 + $0x48] sm:$0xff]  }
  0x78   :  { %529 = vmatprep.subr.bf16.mxu0 %v966_v34  ;;  %v997_v34 = vld [vmem:[#allocation11 + $0x8] sm:$0xff]  }
  0x79   :  { %275 = vmatpush1.bf16.msra.mxu1 %v945_v21 }
  0x7a   :  { %880 = vmatprep.subr.bf16.mxu1 %v994_v31 }
  0x7b   :  { %530 = vmatpush1.bf16.msra.mxu0 %v964_v35  ;;  %v998_v35 = vld [vmem:[#allocation11 + $0x50] sm:$0xff]  }
  0x7c   :  { %531 = vmatprep.subr.bf16.mxu0 %v969_v36  ;;  %v999_v36 = vld [vmem:[#allocation11 + $0x10] sm:$0xff]  }
  0x7f   :  { %532 = vmatpush1.bf16.msra.mxu0 %v967_v37  ;;  %v1000_v37 = vld [vmem:[#allocation11 + $0x58] sm:$0xff]  }
  0x80   :  { %533 = vmatprep.subr.bf16.mxu0 %v972_v53 }
  0x83   :  { %534 = vmatpush1.bf16.msra.mxu0 %v970_v54 }
  0x84   :  { %535 = vmatprep.subr.bf16.mxu0 %v975_v55 }
  0x87   :  { %536 = vmatpush1.bf16.msra.mxu0 %v973_v56 }
  0x88   :  { %537 = vmatprep.subr.bf16.mxu0 %v978_v57 }
  0x8b   :  { %538 = vmatpush1.bf16.msra.mxu0 %v976_v58 }
  0x8c   :  { %539 = vmatprep.subr.bf16.mxu0 %v981_v59 }
  0x8f   :  { %540 = vmatpush1.bf16.msra.mxu0 %v979_v60 }
  0x90   :  { %541 = vmatprep.subr.bf16.mxu0 %v984_v61 }
  0x93   :  { %542 = vmatpush1.bf16.msra.mxu0 %v982_v62 }
  0x94   :  { %543 = vmatprep.subr.bf16.mxu0 %v987_v0 }
  0x97   :  { %544 = vmatpush1.bf16.msra.mxu0 %v985_v63 }
  0x98   :  { %545 = vmatprep.subr.bf16.mxu0 %v990_v1 }
  0x9b   :  { %546 = vmatpush1.bf16.msra.mxu0 %v988_v2 }
  0x9c   :  { %547 = vmatprep.subr.bf16.mxu0 %v993_v3 }
  0x9f   :  { %548 = vmatpush1.bf16.msra.mxu0 %v991_v4 }
 0x132   :  { %v146_v38 = vpop.f32.mrb[0].mxu0 }
 0x133   :  { %v153_v39 = vsub.f32 0.0, %v146_v38  ;;  %v906_v40 = vpop.f32.mrb[1].mxu0  ;;  %v1001_v38 = vld [vmem:[#allocation11 + $0x18] sm:$0xff]  }
 0x134   :  { %v149_v41 = vpop.f32.mrb[2].mxu0  ;;  %v1003_v40 = vld [vmem:[#allocation11 + $0x20] sm:$0xff]  }
 0x135   :  { %v155_v42 = vmul.f32 1.442695, %v153_v39  ;;  %v154_v43 = vsub.f32 0.0, %v149_v41  ;;  %v907_v44 = vpop.f32.mrb[3].mxu0  ;;  %v1002_v39 = vld [vmem:[#allocation11 + $0x60] sm:$0xff]   ;;  %v1004_v41 = vld [vmem:[#allocation11 + $0x68] sm:$0xff]  }
 0x136   :  { %v1007_v44 = vld [vmem:[#allocation11 + $0x30] sm:$0xff]  }
 0x137   :  { %1010 = vpow2.f32 %v155_v42  ;;  %v157_v45 = vmul.f32 1.442695, %v154_v43  ;;  %v1005_v42 = vld [vmem:[#allocation11 + $0x28] sm:$0xff]   ;;  %v1006_v43 = vld [vmem:[#allocation11 + $0x70] sm:$0xff]  }
 0x139   :  { %1012 = vpow2.f32 %v157_v45  ;;  %v1008_v45 = vld [vmem:[#allocation11 + $0x78] sm:$0xff]  }
 0x141   :  { %v1011_v46 = vpop.eup %1010 }
 0x142   :  { %v159_v47 = vadd.f32 1.0, %v1011_v46  ;;  %v1009_v46 = vld [vmem:[#allocation11 + $0x38] sm:$0xff]  }
 0x143   :  { %v1013_v48 = vpop.eup %1012 }
 0x144   :  { %v160_v49 = vadd.f32 1.0, %v1013_v48  ;;  %1014 = vrcp.f32 %v159_v47 }
 0x146   :  { %1016 = vrcp.f32 %v160_v49 }
 0x14e   :  { %v1015_v50 = vpop.eup %1014 }
 0x150   :  { %v1017_v51 = vpop.eup %1016 }
 0x151   :  { %v163_v52 = vpack.c.bf16 %v1017_v51, %v1015_v50 }
 0x153   :  { %293 = vmatmul.mubr.bf16.vlgmr.msra.gmra.mrb[0].mxu1 %v163_v52 }
 0x154   :  { %881 = vmatpush3.bf16.msra.mxu1 %v995_v32 }
 0x155   :  { %882 = vmatprep.subr.bf16.mxu1 %v996_v33 }
 0x158   :  { %883 = vmatpush3.bf16.msra.mxu1 %v997_v34 }
 0x159   :  { %884 = vmatprep.subr.bf16.mxu1 %v998_v35  ;;  %v774_v35 = vstv %s1350_s6 }
 0x15c   :  { %885 = vmatpush3.bf16.msra.mxu1 %v999_v36 }
 0x15d   :  { %886 = vmatprep.subr.bf16.mxu1 %v1000_v37 }
 0x160   :  { %887 = vmatpush3.bf16.msra.mxu1 %v1001_v38 }
 0x161   :  { %888 = vmatprep.subr.bf16.mxu1 %v1002_v39 }
 0x164   :  { %889 = vmatpush3.bf16.msra.mxu1 %v1003_v40 }
 0x165   :  { %890 = vmatprep.subr.bf16.mxu1 %v1004_v41 }
 0x168   :  { %891 = vmatpush3.bf16.msra.mxu1 %v1005_v42 }
 0x169   :  { %892 = vmatprep.subr.bf16.mxu1 %v1006_v43 }
 0x16c   :  { %893 = vmatpush3.bf16.msra.mxu1 %v1007_v44 }
 0x16d   :  { %894 = vmatprep.subr.bf16.mxu1 %v1008_v45 }
 0x170   :  { %895 = vmatpush3.bf16.msra.mxu1 %v1009_v46 }
 0x226   :  { %v294_v5 = vpop.f32.mrb[0].mxu1 }
 0x227   :  { %v303_v6 = vsub.f32 0.0, %v294_v5  ;;  %v296_v7 = vpop.f32.mrb[1].mxu1 }
 0x228   :  { %v304_v8 = vsub.f32 0.0, %v296_v7  ;;  %v298_v9 = vpop.f32.mrb[2].mxu1 }
 0x229   :  { %v307_v10 = vmul.f32 1.442695, %v303_v6  ;;  %v305_v11 = vsub.f32 0.0, %v298_v9  ;;  %v300_v12 = vpop.f32.mrb[3].mxu1 }
 0x22a   :  { %v309_v13 = vmul.f32 1.442695, %v304_v8  ;;  %v306_v14 = vsub.f32 0.0, %v300_v12 }
 0x22b   :  { %1018 = vpow2.f32 %v307_v10  ;;  %v311_v15 = vmul.f32 1.442695, %v305_v11 }
 0x22c   :  { %1020 = vpow2.f32 %v309_v13  ;;  %v313_v16 = vmul.f32 1.442695, %v306_v14 }
 0x22d   :  { %1022 = vpow2.f32 %v311_v15 }
 0x22e   :  { %1024 = vpow2.f32 %v313_v16 }
 0x235   :  { %v1019_v17 = vpop.eup %1018 }
 0x236   :  { %v1021_v18 = vpop.eup %1020  ;;  %v315_v19 = vadd.f32 1.0, %v1019_v17 }
 0x237   :  { %v1023_v20 = vpop.eup %1022  ;;  %v316_v21 = vadd.f32 1.0, %v1021_v18 }
 0x238   :  { %v1025_v22 = vpop.eup %1024  ;;  %1026 = vrcp.f32 %v315_v19  ;;  %v317_v23 = vadd.f32 1.0, %v1023_v20  ;;  %v763_v19 = vlaneseq }
 0x239   :  { %1028 = vrcp.f32 %v316_v21  ;;  %v318_v24 = vadd.f32 1.0, %v1025_v22 }
 0x23a   :  { %1030 = vrcp.f32 %v317_v23  ;;  %v764_v23 = vshrl.u32 %v763_v19, 7  ;;  %v780_v33 = vand.u32 127, %v763_v19 }
 0x23b   :  { %1032 = vrcp.f32 %v318_v24 }
 0x23c   :  { %v785_v34 = vadd.s32 4294967288, %v780_v33  ;;  %v783_v37 = vsub.s32 %v780_v33, %v764_v23 }
 0x23e   :  { %v788_v39 = vsub.s32 %v785_v34, %v764_v23 }
 0x242   :  { %v1027_v25 = vpop.eup %1026 }
 0x243   :  { %v1029_v26 = vpop.eup %1028 }
 0x244   :  { %v1031_v27 = vpop.eup %1030 }
 0x245   :  { %v1033_v28 = vpop.eup %1032  ;;  %v323_v29 = vpack.c.bf16 %v1031_v27, %v1027_v25  ;;  %v761_v25 = vld [vmem:[%s1349_s5] sm:$0x1]  ;;  %v765_v27 = vsub.s32 0, %v764_v23  ;;  %s1210_s5 = smov [#allocation12]  }
 0x246   :  { %v324_v30 = vpack.c.bf16 %v1033_v28, %v1029_v26  ;;  %v762_v26 = vunpack.c.l.bf16 %v761_v25  ;;  %s801_s19 = sshll.u32 %s1210_s5, 4  ;;  %s802_s19 = int_to_ptr.vmem [resolvable:$true] %s801_s19 }
 0x247   :  { %s1168_s20 = scalar_lea.vmem %s802_s19, 16  ;;  %s1172_s21 = scalar_lea.vmem %s802_s19, 32 }
 0x248   :  { %549 = vmatprep.mubr.bf16.mxu0 %v324_v30  ;;  %v766_v28 = vrot.slane %v762_v26, %v765_v27  ;;  %p1169_p12 = scmp.ne.s32.totalorder %s802_s19, %s1168_s20  ;;  %p1173_p13 = scmp.lt.s32.totalorder %s802_s19, %s802_s19 }
 0x249   :  { %550 = vmatmul.mubr.bf16.vlgmr.msra.gmra.mrb[4].mxu0 %v323_v29  ;;  %p1174_p0 = scmp.lt.s32.totalorder %s1172_s21, %s1168_s20 }
 0x24b   :  { %p1175_p1 = por %p1174_p0, %p1173_p13 }
 0x24d   :  { %p1176_p2 = pnand %p1175_p1, %p1169_p12 }
 0x31c   :  { %v551_v47 = vpop.f32.mrb[4].mxu0 }
 0x31d   :  { %v560_v48 = vsub.f32 0.0, %v551_v47  ;;  %v553_v49 = vpop.f32.mrb[5].mxu0 }
 0x31e   :  { %v561_v50 = vsub.f32 0.0, %v553_v49  ;;  %v555_v51 = vpop.f32.mrb[6].mxu0 }
 0x31f   :  { %v564_v52 = vmul.f32 1.442695, %v560_v48  ;;  %v562_v53 = vsub.f32 0.0, %v555_v51  ;;  %v557_v54 = vpop.f32.mrb[7].mxu0 }
 0x320   :  { %v566_v55 = vmul.f32 1.442695, %v561_v50  ;;  %v563_v56 = vsub.f32 0.0, %v557_v54 }
 0x321   :  { %1034 = vpow2.f32 %v564_v52  ;;  %v568_v57 = vmul.f32 1.442695, %v562_v53 }
 0x322   :  { %1036 = vpow2.f32 %v566_v55  ;;  %v570_v58 = vmul.f32 1.442695, %v563_v56 }
 0x323   :  { %1038 = vpow2.f32 %v568_v57 }
 0x324   :  { %1040 = vpow2.f32 %v570_v58 }
 0x32b   :  { %v1035_v59 = vpop.eup %1034 }
 0x32c   :  { %v1037_v60 = vpop.eup %1036  ;;  %v572_v61 = vadd.f32 1.0, %v1035_v59 }
 0x32d   :  { %v1039_v62 = vpop.eup %1038  ;;  %v573_v63 = vadd.f32 1.0, %v1037_v60 }
 0x32e   :  { %v1041_v0 = vpop.eup %1040  ;;  %1042 = vrcp.f32 %v572_v61  ;;  %v574_v1 = vadd.f32 1.0, %v1039_v62 }
 0x32f   :  { %1044 = vrcp.f32 %v573_v63  ;;  %v575_v2 = vadd.f32 1.0, %v1041_v0 }
 0x330   :  { %1046 = vrcp.f32 %v574_v1 }
 0x331   :  { %1048 = vrcp.f32 %v575_v2 }
 0x338   :  { %v1043_v3 = vpop.eup %1042 }
 0x339   :  { %v1045_v4 = vpop.eup %1044 }
 0x33a   :  { %v1047_v5 = vpop.eup %1046 }
 0x33b   :  { %v1049_v6 = vpop.eup %1048  ;;  %v580_v7 = vpack.c.bf16 %v1047_v5, %v1043_v3 }
 0x33c   :  { %v581_v8 = vpack.c.bf16 %v1049_v6, %v1045_v4 }
 0x33e   :  { %742 = vmatprep.mubr.bf16.mxu1 %v581_v8 }
 0x33f   :  { %743 = vmatmul.mubr.bf16.vlgmr.msra.gmra.mrb[4].mxu1 %v580_v7 }
 0x412   :  { %v896_v9 = vpop.f32.mrb[4].mxu1 }
 0x413   :  { %v897_v10 = vpop.f32.mrb[5].mxu1 }
 0x414   :  { %v898_v11 = vadd.f32 %v897_v10, %v896_v9  ;;  %v899_v12 = vpop.f32.mrb[6].mxu1 }
 0x415   :  { %v900_v13 = vpop.f32.mrb[7].mxu1 }
 0x416   :  { %v751_v14 = vsub.f32 0.0, %v898_v11  ;;  %v901_v15 = vadd.f32 %v900_v13, %v899_v12 }
 0x418   :  { %v753_v16 = vmul.f32 1.442695, %v751_v14  ;;  %v752_v17 = vsub.f32 0.0, %v901_v15 }
 0x41a   :  { %1050 = vpow2.f32 %v753_v16  ;;  %v755_v18 = vmul.f32 1.442695, %v752_v17 }
 0x41c   :  { %1052 = vpow2.f32 %v755_v18 }
 0x424   :  { %v1051_v20 = vpop.eup %1050 }
 0x425   :  { %v757_v21 = vadd.f32 1.0, %v1051_v20 }
 0x426   :  { %v1053_v22 = vpop.eup %1052 }
 0x427   :  { %1054 = vrcp.f32 %v757_v21  ;;  %v758_v24 = vadd.f32 1.0, %v1053_v22 }
 0x429   :  { %1056 = vrcp.f32 %v758_v24 }
 0x431   :  { %v1055_v29 = vpop.eup %1054 }
 0x432   :  { %v767_v30 = vmul.f32 %v1055_v29, %v766_v28 }
 0x433   :  { %v1057_v31 = vpop.eup %1056 }
 0x434   :  { %769 = vadd.xlane.f32.xlu0 %v767_v30  ;;  %v768_v32 = vmul.f32 %v1057_v31, %v766_v28 }
 0x438   :  { %771 = vadd.xlane.f32.xlu0 %v768_v32 }
 0x4c1   :  { %v770_v36 = vpop.xlane.xlu0 %769 }
 0x4c2   :  { %v775_v38 = vadd.f32 %v774_v35, %v770_v36 }
 0x4c4   :  { %v784_v42 = vrot.slane %v775_v38, %v783_v37 }
 0x4c5   :  { %v772_v40 = vpop.xlane.xlu0 %771 }
 0x4c6   :  { %v776_v41 = vadd.f32 %v774_v35, %v772_v40 }
 0x4c8   :  { %v789_v43 = vrot.slane %v776_v41, %v788_v39 }
 0x4ca   :  { %v791_v44 = vsel %vm790_vm2, %v789_v43, %v784_v42 }
 0x4cb   :  { %794 = vst.msk [vmem:[#allocation12] sm:$0x1] %vm793_vm3, %v791_v44 }
 0x4cc   :  { %1179 = shalt.err (!%p1176_p2)
}
 0x4cd   :  { %s1180_s23 = scalar_lea.hbm %s1351_s7, 16 }
 0x4ce   :  { %p1181_p3 = scmp.ne.s32.totalorder %s1351_s7, %s1180_s23  ;;  %p1184_p4 = scmp.lt.u32.totalorder %s1180_s23, %s1351_s7 }
 0x4d0   :  { %p1186_p5 = pnand %p1184_p4, %p1181_p3 }
 0x4d2   :  { %1189 = shalt.err (!%p1186_p5)
}
 0x4d3   :  { %804 = dma.vmem_to_hbm [thread:$0]  %s802_s19, 16, %s1351_s7, [#allocation5]  }
 0x4d4   :  { %1196 = dma.done.wait [#allocation5], 16  }
 0x4d5   :  { %1197 = vsyncadd [#allocation5], 4294967280 }
 0x4d6   :  { %808 = vsyncpa [#allocation4], 1 }
 0x4d7   :  { %809 = vsyncpa [#allocation7], 1 }
 0x4d8   :  { %810 = vsyncpa [#allocation10], 1 }
 0x4d9   :  { %811 = vsyncpa [#allocation5], 1 }

</bundles_post_ra>
